<compile_context>
chip_gen: v6e
topology: v6e:2x2x1
jax: 0.10.0
libtpu: 0.0.40
codegen_flags: <defaults>
</compile_context>

<pallas_src>
import jax
import jax.numpy as jnp
from jax.experimental import pallas as pl
from jax.experimental.pallas import tpu as pltpu

HIDDEN = 128   # hidden width of linear_v / linear_w / dec[0]
OUT_PAD = 8    # dec[2] out-features (6) padded to 8 (full last dim of output array)
IN_PAD = 8     # v(3) | w(3) packed + zero-padded to 8 input features


def _round_up(x, m):
    return (x + m - 1) // m * m


def _cdiv(a, b):
    return (a + b - 1) // b


def _fused_mlp_kernel(vw_ref, w_in_ref, w_dec_ref, b_ref, out_ref):
    """Fully fused forward pass on one batch tile.

    vw_ref   : [tm, 8]    f32   (v in cols 0:3, w in 3:6, zeros 6:8; ones folded into biases)
    w_in_ref : [8, 256]   bf16  block-diagonal [[Wv, 0], [0, Ww]]
    w_dec_ref: [128, 136] bf16  (cols 0:128 = W1, 128:136 = W2 zero-padded)
    b_ref    : [1, 392]   f32   (bv', bw', b1, b2_padded)
    out_ref  : [tm, 8]    bf16  (valid output columns: 0..5)
    """
    bv = b_ref[:, 0:HIDDEN]
    bw = b_ref[:, HIDDEN:2 * HIDDEN]
    b1 = b_ref[:, 2 * HIDDEN:3 * HIDDEN]
    b2 = b_ref[:, 3 * HIDDEN:3 * HIDDEN + OUT_PAD]

    vw = vw_ref[...].astype(jnp.bfloat16)                               # [tm, 8]
    # One MXU push computes both first-layer projections (block-diagonal weight).
    h12 = jnp.dot(vw, w_in_ref[...], preferred_element_type=jnp.float32)  # [tm, 256] f32
    h1 = jnp.maximum(h12[:, :HIDDEN] + bv, 0.0).astype(jnp.bfloat16)
    h2 = jnp.maximum(h12[:, HIDDEN:] + bw, 0.0).astype(jnp.bfloat16)
    h = h1 * h2                                                          # bf16 [tm, 128]
    h = jnp.maximum(
        jnp.dot(h, w_dec_ref[:, :HIDDEN], preferred_element_type=jnp.float32) + b1,
        0.0).astype(jnp.bfloat16)
    out = jnp.dot(h, w_dec_ref[:, HIDDEN:], preferred_element_type=jnp.float32) + b2
    out_ref[...] = out.astype(out_ref.dtype)


def test_model_forward(v, w, packed, block_b=2048):
    """v, w: [B, 3] float32. packed = pack_params(...). Returns (out[:, :3], out[:, 3:6])."""
    w_in, w_dec, b_all = packed
    B = v.shape[0]

    # Pack v|w into one lane-aligned [B, 8] input (ones column already folded into biases).
    vw = jnp.zeros((B, IN_PAD), jnp.float32).at[:, 0:3].set(v).at[:, 3:6].set(w)

    # Batch tile: multiple of 16 (bf16 sublane packing). Ensure >=2 grid steps
    # when the batch is large enough so both v7x TensorCores get work.
    tm_full = min(block_b, _round_up(max(B, 1), 16))
    if B >= 64:
        tm = min(tm_full, _round_up(_cdiv(B, 2), 16))
    else:
        tm = tm_full
    Bp = _round_up(B, tm)
    if Bp != B:
        vw = jnp.pad(vw, ((0, Bp - B), (0, 0)))

    grid = (Bp // tm,)

    flops = 2 * Bp * (IN_PAD * 2 * HIDDEN + HIDDEN * HIDDEN + HIDDEN * OUT_PAD)
    bytes_accessed = (Bp * IN_PAD * 4                       # packed inputs (f32)
                      + w_in.size * w_in.dtype.itemsize     # first-layer weights (bf16)
                      + w_dec.size * w_dec.dtype.itemsize   # decoder weights (bf16)
                      + b_all.size * 4                      # biases (f32)
                      + Bp * OUT_PAD * 2)                   # output (bf16)

    out = pl.pallas_call(
        _fused_mlp_kernel,
        out_shape=jax.ShapeDtypeStruct((Bp, OUT_PAD), jnp.bfloat16),
        grid=grid,
        in_specs=[
            pl.BlockSpec((tm, IN_PAD), lambda i: (i, 0)),                      # packed v|w tile
            pl.BlockSpec((IN_PAD, 2 * HIDDEN), lambda i: (0, 0)),              # [[Wv,0],[0,Ww]] (resident)
            pl.BlockSpec((HIDDEN, HIDDEN + OUT_PAD), lambda i: (0, 0)),        # W1|W2 (resident)
            pl.BlockSpec((1, 3 * HIDDEN + OUT_PAD), lambda i: (0, 0)),         # biases (resident)
        ],
        out_specs=pl.BlockSpec((tm, OUT_PAD), lambda i: (i, 0)),
        compiler_params=pltpu.CompilerParams(
            dimension_semantics=("parallel",)),
        cost_estimate=pl.CostEstimate(
            flops=flops, transcendentals=0, bytes_accessed=bytes_accessed),
    )(vw, w_in, w_dec, b_all)

    out = out[:B, :6].astype(jnp.float32)
    return out[:, :3], out[:, 3:]


def init_params(key):
    """Deterministic parameter init matching the nn.Linear shapes (weights stored [in, out])."""
    def linear(k, fan_in, fan_out):
        kw, kb = jax.random.split(k)
        bound = 1.0 / jnp.sqrt(fan_in)
        W = jax.random.uniform(kw, (fan_in, fan_out), jnp.float32, -bound, bound)
        b = jax.random.uniform(kb, (fan_out,), jnp.float32, -bound, bound)
        return W, b

    k_v, k_w, k_d1, k_d2 = jax.random.split(key, 4)
    return (
        linear(k_v, 4, HIDDEN),       # linear_v
        linear(k_w, 4, HIDDEN),       # linear_w
        linear(k_d1, HIDDEN, HIDDEN), # dec[0]
        linear(k_d2, HIDDEN, 6),      # dec[2]
    )


def pack_params(params, weight_dtype=jnp.bfloat16):
    """Pack params into 3 slabs; fold the ones column into biases; pad W2/b2 to 8 columns."""
    (wv, bv), (ww, bw), (w1, b1), (w2, b2) = params
    # Fold the constant-ones input column: y = [x,1] @ W + b == x @ W[:3] + (b + W[3]).
    bv_f = bv + wv[3]
    bw_f = bw + ww[3]
    # Block-diagonal first-layer weight: rows 0:3 -> Wv[:3], rows 3:6 -> Ww[:3], rows 6:8 -> 0.
    w_in = jnp.zeros((IN_PAD, 2 * HIDDEN), jnp.float32)
    w_in = w_in.at[0:3, 0:HIDDEN].set(wv[:3]).at[3:6, HIDDEN:2 * HIDDEN].set(ww[:3])
    w_in = w_in.astype(weight_dtype)                                          # [8, 256]
    # Decoder slab: W1 | W2 (6 -> 8 output cols, padding stays exactly zero).
    w2_pad = jnp.zeros((HIDDEN, OUT_PAD), jnp.float32).at[:, :6].set(w2)
    w_dec = jnp.concatenate([w1, w2_pad], axis=1).astype(weight_dtype)        # [128, 136]
    b2_pad = jnp.zeros((OUT_PAD,), jnp.float32).at[:6].set(b2)
    b_all = jnp.concatenate([bv_f, bw_f, b1, b2_pad]).reshape(1, 3 * HIDDEN + OUT_PAD)  # [1, 392]
    return w_in, w_dec, b_all


def _reference_forward_packed(v, w, packed):
    """Pure-JAX reference mimicking the kernel math exactly (bf16 operands, f32 acc, bf16 out)."""
    w_in, w_dec, b = packed
    bv, bw = b[:, :HIDDEN], b[:, HIDDEN:2 * HIDDEN]
    b1, b2 = b[:, 2 * HIDDEN:3 * HIDDEN], b[:, 3 * HIDDEN:]
    B = v.shape[0]
    vw = jnp.zeros((B, IN_PAD), jnp.float32).at[:, 0:3].set(v).at[:, 3:6].set(w)
    h12 = jnp.dot(vw.astype(jnp.bfloat16), w_in, preferred_element_type=jnp.float32)
    h1 = jnp.maximum(h12[:, :HIDDEN] + bv, 0.0).astype(jnp.bfloat16)
    h2 = jnp.maximum(h12[:, HIDDEN:] + bw, 0.0).astype(jnp.bfloat16)
    h = h1 * h2
    h = jnp.maximum(jnp.dot(h, w_dec[:, :HIDDEN], preferred_element_type=jnp.float32) + b1,
                    0.0).astype(jnp.bfloat16)
    out = jnp.dot(h, w_dec[:, HIDDEN:], preferred_element_type=jnp.float32) + b2
    out = out.astype(jnp.bfloat16).astype(jnp.float32)[:, :6]
    return out[:, :3], out[:, 3:]


def _reference_forward_f32(v, w, params):
    """Original (PyTorch-semantics) float32 reference on the unpacked params."""
    B = v.shape[0]
    ones = jnp.ones((B, 1), dtype=v.dtype)
    v_aug = jnp.concatenate([v, ones], axis=1)
    w_aug = jnp.concatenate([w, ones], axis=1)
    (wv, bv), (ww, bw), (w1, b1), (w2, b2) = params
    h1 = jnp.maximum(v_aug @ wv + bv, 0.0)
    h2 = jnp.maximum(w_aug @ ww + bw, 0.0)
    h = h1 * h2
    h = jnp.maximum(h @ w1 + b1, 0.0)
    h = h @ w2 + b2
    return h[:, :3], h[:, 3:]


if __name__ == "__main__":
    key = jax.random.PRNGKey(0)
    k_params, k_v, k_w = jax.random.split(key, 3)

    params = init_params(k_params)
    packed = pack_params(params)

    B = 8
    v = jax.random.normal(k_v, (B, 3), dtype=jnp.float32)
    w = jax.random.normal(k_w, (B, 3), dtype=jnp.float32)

    out_a, out_b = test_model_forward(v, w, packed)
    jax.block_until_ready((out_a, out_b))

    # Check against a reference that mimics the kernel's bf16/f32 math exactly.
    ref_a, ref_b = _reference_forward_packed(v, w, packed)
    assert jnp.allclose(out_a, ref_a, atol=2e-2, rtol=2e-2)
    assert jnp.allclose(out_b, ref_b, atol=2e-2, rtol=2e-2)

    # Semantics check against the original float32 formulation (looser tolerance
    # because weights/activations/output are bf16 on the MXU).
    ref_a32, ref_b32 = _reference_forward_f32(v, w, params)
    assert jnp.allclose(out_a, ref_a32, atol=5e-2, rtol=5e-2)
    assert jnp.allclose(out_b, ref_b32, atol=5e-2, rtol=5e-2)

    print("KERNEL_OK")
</pallas_src>

<mosaic_0001>
module attributes {stable_mosaic.version = 11 : i64} {
  func.func @_fused_mlp_kernel(%arg0: i32, %arg1: memref<16x8xf32, #tpu.memory_space<vmem>>, %arg2: memref<8x256xbf16, #tpu.memory_space<vmem>>, %arg3: memref<128x136xbf16, #tpu.memory_space<vmem>>, %arg4: memref<1x392xf32, #tpu.memory_space<vmem>>, %arg5: memref<16x8xbf16, #tpu.memory_space<vmem>>) attributes {dimension_semantics = [#tpu.dimension_semantics<parallel>], iteration_bounds = array<i64: 1>, scalar_prefetch = 0 : i64, scratch_operands = 0 : i64, tpu.core_type = #tpu.core_type<tc>, window_params = [{transform_indices = @transform_0, window_bounds = array<i64: 16, 8>}, {pipeline_mode = #tpu.pipeline_mode<synchronous>, transform_indices = @transform_1, window_bounds = array<i64: 8, 256>}, {pipeline_mode = #tpu.pipeline_mode<synchronous>, transform_indices = @transform_2, window_bounds = array<i64: 128, 136>}, {pipeline_mode = #tpu.pipeline_mode<synchronous>, transform_indices = @transform_3, window_bounds = array<i64: 1, 392>}, {transform_indices = @transform_4, window_bounds = array<i64: 16, 8>}]} {
    %c0 = arith.constant 0 : index
    %c0_0 = arith.constant 0 : index
    %0 = vector.load %arg4[%c0, %c0_0] : memref<1x392xf32, #tpu.memory_space<vmem>>, vector<1x128xf32>
    %c0_1 = arith.constant 0 : index
    %c128 = arith.constant 128 : index
    %1 = vector.load %arg4[%c0_1, %c128] : memref<1x392xf32, #tpu.memory_space<vmem>>, vector<1x128xf32>
    %c0_2 = arith.constant 0 : index
    %c256 = arith.constant 256 : index
    %2 = vector.load %arg4[%c0_2, %c256] : memref<1x392xf32, #tpu.memory_space<vmem>>, vector<1x128xf32>
    %c0_3 = arith.constant 0 : index
    %c384 = arith.constant 384 : index
    %3 = vector.load %arg4[%c0_3, %c384] : memref<1x392xf32, #tpu.memory_space<vmem>>, vector<1x8xf32>
    %c0_4 = arith.constant 0 : index
    %c0_5 = arith.constant 0 : index
    %4 = vector.load %arg1[%c0_4, %c0_5] : memref<16x8xf32, #tpu.memory_space<vmem>>, vector<16x8xf32>
    %5 = arith.truncf %4 : vector<16x8xf32> to vector<16x8xbf16>
    %c0_6 = arith.constant 0 : index
    %c0_7 = arith.constant 0 : index
    %6 = vector.load %arg2[%c0_6, %c0_7] : memref<8x256xbf16, #tpu.memory_space<vmem>>, vector<8x256xbf16>
    %cst = arith.constant dense<0.000000e+00> : vector<16x256xf32>
    %7 = tpu.matmul %5, %6, %cst {dimension_numbers = #tpu.dot_dimension_numbers<[1], [0], [0], [1], [0, 0, 1, 1], [], []>} : vector<16x8xbf16>, vector<8x256xbf16>, vector<16x256xf32> -> vector<16x256xf32>
    %8 = vector.extract_strided_slice %7 {offsets = [0, 0], sizes = [16, 128], strides = [1, 1]} : vector<16x256xf32> to vector<16x128xf32>
    %9 = vector.broadcast %0 : vector<1x128xf32> to vector<16x128xf32>
    %10 = arith.addf %8, %9 : vector<16x128xf32>
    %cst_8 = arith.constant 0.000000e+00 : f32
    %11 = vector.broadcast %cst_8 : f32 to vector<16x128xf32>
    %12 = arith.maximumf %10, %11 : vector<16x128xf32>
    %13 = arith.truncf %12 : vector<16x128xf32> to vector<16x128xbf16>
    %14 = vector.extract_strided_slice %7 {offsets = [0, 128], sizes = [16, 128], strides = [1, 1]} : vector<16x256xf32> to vector<16x128xf32>
    %15 = vector.broadcast %1 : vector<1x128xf32> to vector<16x128xf32>
    %16 = arith.addf %14, %15 : vector<16x128xf32>
    %cst_9 = arith.constant 0.000000e+00 : f32
    %17 = vector.broadcast %cst_9 : f32 to vector<16x128xf32>
    %18 = arith.maximumf %16, %17 : vector<16x128xf32>
    %19 = arith.truncf %18 : vector<16x128xf32> to vector<16x128xbf16>
    %20 = arith.mulf %13, %19 : vector<16x128xbf16>
    %c0_10 = arith.constant 0 : index
    %c0_11 = arith.constant 0 : index
    %21 = vector.load %arg3[%c0_10, %c0_11] : memref<128x136xbf16, #tpu.memory_space<vmem>>, vector<128x128xbf16>
    %cst_12 = arith.constant dense<0.000000e+00> : vector<16x128xf32>
    %22 = tpu.matmul %20, %21, %cst_12 {dimension_numbers = #tpu.dot_dimension_numbers<[1], [0], [0], [1], [0, 0, 1, 1], [], []>} : vector<16x128xbf16>, vector<128x128xbf16>, vector<16x128xf32> -> vector<16x128xf32>
    %23 = vector.broadcast %2 : vector<1x128xf32> to vector<16x128xf32>
    %24 = arith.addf %22, %23 : vector<16x128xf32>
    %cst_13 = arith.constant 0.000000e+00 : f32
    %25 = vector.broadcast %cst_13 : f32 to vector<16x128xf32>
    %26 = arith.maximumf %24, %25 : vector<16x128xf32>
    %27 = arith.truncf %26 : vector<16x128xf32> to vector<16x128xbf16>
    %c0_14 = arith.constant 0 : index
    %c128_15 = arith.constant 128 : index
    %28 = vector.load %arg3[%c0_14, %c128_15] : memref<128x136xbf16, #tpu.memory_space<vmem>>, vector<128x8xbf16>
    %cst_16 = arith.constant dense<0.000000e+00> : vector<16x8xf32>
    %29 = tpu.matmul %27, %28, %cst_16 {dimension_numbers = #tpu.dot_dimension_numbers<[1], [0], [0], [1], [0, 0, 1, 1], [], []>} : vector<16x128xbf16>, vector<128x8xbf16>, vector<16x8xf32> -> vector<16x8xf32>
    %30 = vector.broadcast %3 : vector<1x8xf32> to vector<16x8xf32>
    %31 = arith.addf %29, %30 : vector<16x8xf32>
    %32 = arith.truncf %31 : vector<16x8xf32> to vector<16x8xbf16>
    %c0_17 = arith.constant 0 : index
    %c0_18 = arith.constant 0 : index
    %33 = vector.load %arg5[%c0_17, %c0_18] : memref<16x8xbf16, #tpu.memory_space<vmem>>, vector<16x8xbf16>
    tpu.vector_store %arg5[%c0_17, %c0_18], %32 {strides = array<i32>} : memref<16x8xbf16, #tpu.memory_space<vmem>>, vector<16x8xbf16>,
    return
  }
  func.func @transform_0(%arg0: i32) -> (i32, i32) {
    %c0_i32 = arith.constant 0 : i32
    %c0_i32_0 = arith.constant 0 : i32
    return %arg0, %c0_i32 : i32, i32
  }
  func.func @transform_1(%arg0: i32) -> (i32, i32) {
    %c0_i32 = arith.constant 0 : i32
    %c0_i32_0 = arith.constant 0 : i32
    %c0_i32_1 = arith.constant 0 : i32
    return %c0_i32, %c0_i32_0 : i32, i32
  }
  func.func @transform_2(%arg0: i32) -> (i32, i32) {
    %c0_i32 = arith.constant 0 : i32
    %c0_i32_0 = arith.constant 0 : i32
    %c0_i32_1 = arith.constant 0 : i32
    return %c0_i32, %c0_i32_0 : i32, i32
  }
  func.func @transform_3(%arg0: i32) -> (i32, i32) {
    %c0_i32 = arith.constant 0 : i32
    %c0_i32_0 = arith.constant 0 : i32
    %c0_i32_1 = arith.constant 0 : i32
    return %c0_i32, %c0_i32_0 : i32, i32
  }
  func.func @transform_4(%arg0: i32) -> (i32, i32) {
    %c0_i32 = arith.constant 0 : i32
    %c0_i32_0 = arith.constant 0 : i32
    return %arg0, %c0_i32 : i32, i32
  }
}

</mosaic_0001>

<bundles_post_ra>
// kernel: tpu_custom_call.1
= control target key start
LH: loop header
LB: loop body
LE: loop exit
PB: predicated region body
PF: predicated region fallthrough
CT: control target
= control target key end

     0   :  { %vm35_vm0 = vcmask 1043456   ;;  %v455_v1 = vmov 0   ;;  %v456_v4 = vmov 0.0   ;;  %vm31_vm1 = vcmask 64512   ;;  %s576_s1 = inlined_call_operand.vmem [shape: bf16[8,256], index: 1, kind: input, shape index: {}]   ;;  %s577_s0 = inlined_call_operand.vmem [shape: f32[16,8], index: 0, kind: input, shape index: {}]   ;;  %s578_s2 = inlined_call_operand.vmem [shape: bf16[128,136], index: 2, kind: input, shape index: {}]   ;;  %s579_s3 = inlined_call_operand.vmem [shape: f32[1,392], index: 3, kind: input, shape index: {}]   ;;  %s580_s4 = inlined_call_operand.vmem [shape: bf16[16,8], index: 4, kind: output, shape index: {}]  }
   0x1   :  { %v25_v0 = vld [vmem:[%s576_s1] sm:$0xff]  ;;  %74 = vmatprep.mubr.bf16.mxu0 %v455_v1  ;;  %v23_v3 = vld [vmem:[%s577_s0 + $0x8] sm:$0xff]  ;;  %394 = vmatprep.subr.bf16.mxu1 %v456_v4  ;;  %v439_v7 = vld [vmem:[%s578_s2 + $0x70] ss:$8 sps:$4 sm:$0xff]   ;;  %vm457_vm2 = vmmov 0   ;;  %vm341_vm3 = vcmask 60416  }
   0x2   :  { %v22_v2 = vld [vmem:[%s577_s0] sm:$0xff]  ;;  %v349_v5 = vcombine.high %v25_v0, %v25_v0  ;;  %v348_v6 = vcombine.low %v25_v0, %v25_v0  ;;  %395 = vmatpush3.bf16.msra.mxu1 %v439_v7  ;;  %v441_v11 = vld [vmem:[%s578_s2 + $0x50] ss:$8 sps:$4 sm:$0xff]   ;;  %410 = vmatprep.mubr.msk.bf16.mxu1 %vm457_vm2, %v456_v4  ;;  %v447_v17 = vld [vmem:[%s578_s2 + $0x74] ss:$8 sps:$4 sm:$0xff]  }
   0x3   :  { %v440_v8 = vld [vmem:[%s578_s2 + $0x60] ss:$8 sps:$4 sm:$0xff]   ;;  %v24_v10 = vpack.c.bf16 %v23_v3, %v22_v2  ;;  %396 = vmatprep.subr.bf16.mxu1 %v456_v4  ;;  %v443_v13 = vld [vmem:[%s578_s2 + $0x30] ss:$8 sps:$4 sm:$0xff]   ;;  %v448_v18 = vld [vmem:[%s578_s2 + $0x64] ss:$8 sps:$4 sm:$0xff]  }
   0x4   :  { %350 = vmatprep.subr.msk.bf16.mxu0 %vm35_vm0, %v349_v5  ;;  %v37_v9 = vsel %vm35_vm0, %v348_v6, 0  ;;  %v442_v12 = vld [vmem:[%s578_s2 + $0x40] ss:$8 sps:$4 sm:$0xff]   ;;  %v445_v15 = vld [vmem:[%s578_s2 + $0x10] ss:$8 sps:$4 sm:$0xff]  }
   0x5   :  { %57 = vmatpush1.bf16.msra.mxu0 %v37_v9  ;;  %v444_v14 = vld [vmem:[%s578_s2 + $0x20] ss:$8 sps:$4 sm:$0xff]   ;;  %v449_v19 = vld [vmem:[%s578_s2 + $0x54] ss:$8 sps:$4 sm:$0xff]   ;;  %v450_v20 = vld [vmem:[%s578_s2 + $0x44] ss:$8 sps:$4 sm:$0xff]  }
   0x6   :  { %414 = vmatprep.subr.bf16.mxu0 %v456_v4  ;;  %397 = vmatpush3.bf16.msra.mxu1 %v440_v8  ;;  %v446_v16 = vld [vmem:[%s578_s2] ss:$8 sps:$4 sm:$0xff]   ;;  %v451_v21 = vld [vmem:[%s578_s2 + $0x34] ss:$8 sps:$4 sm:$0xff]   ;;  %v452_v39 = vld [vmem:[%s578_s2 + $0x24] ss:$8 sps:$4 sm:$0xff]  }
   0x7   :  { %398 = vmatprep.subr.bf16.mxu1 %v456_v4  ;;  %v352_v23 = vld [vmem:[%s579_s3] ss:$0 sm:$0xff]  ;;  %v353_v24 = vld [vmem:[%s579_s3 + $0x1] ss:$0 sm:$0xff]  ;;  %v453_v40 = vld [vmem:[%s578_s2 + $0x14] ss:$8 sps:$4 sm:$0xff]  }
   0x8   :  { %351 = vmatmul.mubr.msk.bf16.vlgmr.msra.gmra.mxu0 %vm31_vm1, %v24_v10  ;;  %v454_v41 = vld [vmem:[%s578_s2 + $0x4] ss:$8 sps:$4 sm:$0xff]   ;;  %v354_v42 = vld [vmem:[%s579_s3 + $0x2] ss:$0 sm:$0xff]  ;;  %v363_v52 = vld [vmem:[%s579_s3 + $0x3] ss:$0 sm:$0xff] }
   0x9   :  { %430 = vmatprep.mubr.msk.bf16.mxu0 %vm457_vm2, %v456_v4  ;;  %415 = vmatpush3.bf16.msra.mxu0 %v447_v17 }
   0xa   :  { %399 = vmatpush3.bf16.msra.mxu1 %v441_v11  ;;  %416 = vmatprep.subr.bf16.mxu0 %v456_v4 }
   0xb   :  { %400 = vmatprep.subr.bf16.mxu1 %v456_v4 }
   0xd   :  { %417 = vmatpush3.bf16.msra.mxu0 %v448_v18 }
   0xe   :  { %401 = vmatpush3.bf16.msra.mxu1 %v442_v12  ;;  %418 = vmatprep.subr.bf16.mxu0 %v456_v4 }
   0xf   :  { %402 = vmatprep.subr.bf16.mxu1 %v456_v4 }
  0x11   :  { %419 = vmatpush3.bf16.msra.mxu0 %v449_v19 }
  0x12   :  { %403 = vmatpush3.bf16.msra.mxu1 %v443_v13  ;;  %420 = vmatprep.subr.bf16.mxu0 %v456_v4 }
  0x13   :  { %404 = vmatprep.subr.bf16.mxu1 %v456_v4 }
  0x15   :  { %421 = vmatpush3.bf16.msra.mxu0 %v450_v20 }
  0x16   :  { %405 = vmatpush3.bf16.msra.mxu1 %v444_v14  ;;  %422 = vmatprep.subr.bf16.mxu0 %v456_v4 }
  0x17   :  { %406 = vmatprep.subr.bf16.mxu1 %v456_v4 }
  0x19   :  { %423 = vmatpush3.bf16.msra.mxu0 %v451_v21 }
  0x1a   :  { %407 = vmatpush3.bf16.msra.mxu1 %v445_v15  ;;  %424 = vmatprep.subr.bf16.mxu0 %v456_v4 }
  0x1b   :  { %408 = vmatprep.subr.bf16.mxu1 %v456_v4 }
  0x1d   :  { %425 = vmatpush3.bf16.msra.mxu0 %v452_v39 }
  0x1e   :  { %409 = vmatpush3.bf16.msra.mxu1 %v446_v16  ;;  %426 = vmatprep.subr.bf16.mxu0 %v456_v4 }
  0x21   :  { %427 = vmatpush3.bf16.msra.mxu0 %v453_v40 }
  0x22   :  { %428 = vmatprep.subr.bf16.mxu0 %v456_v4 }
  0x25   :  { %429 = vmatpush3.bf16.msra.mxu0 %v454_v41 }
  0xc8   :  { %v76_v22 = vpop.f32.mrf.mxu0 }
  0xc9   :  { %v91_v27 = vadd.f32 %v352_v23, %v76_v22 }
  0xca   :  { %v78_v25 = vpop.f32.mrf.mxu0 }
  0xcb   :  { %v102_v28 = vadd.f32 %v353_v24, %v78_v25  ;;  %v93_v33 = vmax.f32 %v91_v27, 0.0 }
  0xcc   :  { %v80_v26 = vpop.f32.mrf.mxu0 }
  0xcd   :  { %v92_v29 = vadd.f32 %v352_v23, %v80_v26  ;;  %v104_v34 = vmax.f32 %v102_v28, 0.0 }
  0xce   :  { %v82_v30 = vpop.f32.mrf.mxu0 }
  0xcf   :  { %v94_v31 = vmax.f32 %v92_v29, 0.0  ;;  %v103_v32 = vadd.f32 %v353_v24, %v82_v30 }
  0xd1   :  { %v105_v35 = vmax.f32 %v103_v32, 0.0  ;;  %v95_v36 = vpack.c.bf16 %v94_v31, %v93_v33 }
  0xd3   :  { %v106_v37 = vpack.c.bf16 %v105_v35, %v104_v34 }
  0xd5   :  { %v107_v38 = vmul.bf16 %v106_v37, %v95_v36 }
  0xd7   :  { %411 = vmatmul.mubr.bf16.vlgmr.msra.gmra.mxu1 %v107_v38 }
 0x197   :  { %v212_v43 = vpop.f32.mrf.mxu1 }
 0x198   :  { %v213_v45 = vadd.f32 %v354_v42, %v212_v43 }
 0x199   :  { %v412_v44 = vpop.f32.mrf.mxu1 }
 0x19a   :  { %v219_v49 = vmax.f32 %v213_v45, 0.0 }
 0x19b   :  { %v215_v46 = vpop.f32.mrf.mxu1 }
 0x19c   :  { %v216_v47 = vadd.f32 %v354_v42, %v215_v46 }
 0x19d   :  { %v413_v48 = vpop.f32.mrf.mxu1 }
 0x19e   :  { %v220_v50 = vmax.f32 %v216_v47, 0.0 }
 0x1a0   :  { %v221_v51 = vpack.c.bf16 %v220_v50, %v219_v49 }
 0x1a2   :  { %431 = vmatmul.mubr.bf16.vlgmr.msra.gmra.mxu0 %v221_v51 }
 0x262   :  { %v326_v53 = vpop.f32.mrf.mxu0 }
 0x263   :  { %v327_v54 = vadd.f32 %v363_v52, %v326_v53 }
 0x264   :  { %v432_v55 = vpop.f32.mrf.mxu0 }
 0x265   :  { %v374_v56 = vpack.c.bf16 %v327_v54, %v327_v54 }
 0x266   :  { %v329_v57 = vpop.f32.mrf.mxu0 }
 0x267   :  { %342 = vst.msk [vmem:[%s580_s4] sm:$0xf] %vm341_vm3, %v374_v56  ;;  %v330_v58 = vadd.f32 %v363_v52, %v329_v57 }
 0x268   :  { %v433_v59 = vpop.f32.mrf.mxu0 }
 0x269   :  { %v375_v60 = vpack.c.bf16 %v330_v58, %v330_v58 }
 0x26b   :  { %343 = vst.msk [vmem:[%s580_s4 + $0x4] sm:$0xf] %vm341_vm3, %v375_v60 }

</bundles_post_ra>
